<compile_context>
chip_gen: v5e
topology: v5e:2x2
jax: 0.10.0
libtpu: 0.0.40
codegen_flags: <defaults>
</compile_context>

<pallas_src>
import math
import jax
import jax.numpy as jnp
from jax import lax
from jax.experimental import pallas as pl
from jax.experimental.pallas import tpu as pltpu

# ---- model config (small, consistent with the module) ----
BATCH      = 2
SEQ        = 8
D_MODEL    = 32
N_HEADS    = 4
N_KV_HEADS = 2
HEAD_DIM   = D_MODEL // N_HEADS          # 8
N_REP      = N_HEADS // N_KV_HEADS       # 2

Q_W   = N_HEADS * HEAD_DIM               # 32
KV_W  = N_KV_HEADS * HEAD_DIM            # 16
QKV_W = Q_W + 2 * KV_W                   # 64  (q | k | v)
FUSED_W = 2 * QKV_W                      # 128 (q | k | v | rot(q) | rot(k) | zero-pad)

Q_OFF, K_OFF, V_OFF = 0, Q_W, Q_W + KV_W


def attention_kernel(x_ref, w_ref, cos_ref, sin_ref, wo_ref, o_ref, attn_ref):
    """x_ref:(B*S,D)  w_ref:(D,128)  cos/sin:(B*S,64)  wo:(32,D)  o:(B*S,D)  attn scratch:(B*S,32)."""
    f32 = jnp.float32

    # One fused projection: [q*scale | k | v | rot(q)*scale | rot(k) | 0]  -> (B*S, 128) = 1 vreg wide.
    proj = jnp.dot(x_ref[...], w_ref[...], preferred_element_type=f32)

    # Fused RoPE for q and k (v passes through: its cos lanes are 1, its sin lanes hit zero columns).
    #   out[2i]   = x[2i]*cos - x[2i+1]*sin
    #   out[2i+1] = x[2i+1]*cos + x[2i]*sin       (rot() realized by the block-diagonal matmul above)
    qkv = proj[:, :QKV_W] * cos_ref[...] + proj[:, QKV_W:FUSED_W] * sin_ref[...]

    # In-kernel causal mask (start_pos = 0).
    row = lax.broadcasted_iota(jnp.int32, (SEQ, SEQ), 0)
    col = lax.broadcasted_iota(jnp.int32, (SEQ, SEQ), 1)
    neg_mask = jnp.where(col > row, jnp.float32(-1e9), jnp.float32(0.0))

    trans_b = (((1,), (1,)), ((), ()))   # contract last dims: q @ k^T without an explicit transpose

    for b in range(BATCH):               # static unrolled (batch folded into one invocation)
        r0, r1 = b * SEQ, (b + 1) * SEQ
        for h in range(N_HEADS):
            kvh = h // N_REP             # repeat_kv mapping
            qh = qkv[r0:r1, Q_OFF + h * HEAD_DIM:Q_OFF + (h + 1) * HEAD_DIM]      # (S, hd), pre-scaled
            kh = qkv[r0:r1, K_OFF + kvh * HEAD_DIM:K_OFF + (kvh + 1) * HEAD_DIM]  # (S, hd)
            vh = qkv[r0:r1, V_OFF + kvh * HEAD_DIM:V_OFF + (kvh + 1) * HEAD_DIM]  # (S, hd)

            s = lax.dot_general(qh, kh, trans_b, preferred_element_type=f32)      # (S, S)
            s = s + neg_mask
            s = s - jnp.max(s, axis=-1, keepdims=True)
            p = jnp.exp(s)                                                        # unnormalized probs
            pv = jnp.dot(p, vh, preferred_element_type=f32)                       # (S, hd)
            inv = pl.reciprocal(jnp.sum(p, axis=-1, keepdims=True), approx=True)  # EUP, not VALU divide
            attn_ref[r0:r1, h * HEAD_DIM:(h + 1) * HEAD_DIM] = pv * inv           # static-offset store

    # Single output projection from the lane-contiguous scratch.
    o_ref[...] = jnp.dot(attn_ref[...], wo_ref[...], preferred_element_type=f32)


# ---------------- glue: RoPE tables / fused-weight construction (plain JAX, outside kernel) -------
def rope_perm_matrix(dim):
    """Block-diagonal pair rotation: (x @ P)[2i] = -x[2i+1], (x @ P)[2i+1] = x[2i]."""
    p = jnp.zeros((dim, dim), jnp.float32)
    idx = jnp.arange(0, dim, 2)
    p = p.at[idx + 1, idx].set(-1.0)
    p = p.at[idx, idx + 1].set(1.0)
    return p


def rope_tables(seq, head_dim, theta=10000.0):
    """Raw cos/sin of shape (seq, head_dim//2) (matches torch polar freqs_cis)."""
    freqs = 1.0 / (theta ** (jnp.arange(0, head_dim, 2, dtype=jnp.float32) / head_dim))
    angles = jnp.outer(jnp.arange(seq, dtype=jnp.float32), freqs)
    return jnp.cos(angles), jnp.sin(angles)


def attention_pallas(x, wq, wk, wv, wo):
    b, s, d = x.shape
    scale = 1.0 / math.sqrt(HEAD_DIM)

    # --- RoPE cos/sin, interleaved per pair and tiled per head, with a pass-through block for v ---
    cos, sin = rope_tables(s, HEAD_DIM)
    cos_i = jnp.repeat(cos, 2, axis=-1)                       # (s, hd): [c0,c0,c1,c1,...]
    sin_i = jnp.repeat(sin, 2, axis=-1)
    cos_full = jnp.concatenate(
        [jnp.tile(cos_i, (1, N_HEADS)), jnp.tile(cos_i, (1, N_KV_HEADS)),
         jnp.ones((s, KV_W), jnp.float32)], axis=1)           # (s, 64)
    sin_full = jnp.concatenate(
        [jnp.tile(sin_i, (1, N_HEADS)), jnp.tile(sin_i, (1, N_KV_HEADS)),
         jnp.zeros((s, KV_W), jnp.float32)], axis=1)          # (s, 64)
    cos_full = jnp.tile(cos_full, (b, 1))                     # (b*s, 64)
    sin_full = jnp.tile(sin_full, (b, 1))

    # --- fused projection weight: [wq*scale | wk | wv | (wq*scale)@Pq | wk@Pk | 0] -> (d, 128) ---
    pq = rope_perm_matrix(Q_W)
    pk = rope_perm_matrix(KV_W)
    wq_s = wq * scale                                         # fold 1/sqrt(head_dim) into wq
    w_fused = jnp.concatenate(
        [wq_s, wk, wv, wq_s @ pq, wk @ pk, jnp.zeros((d, KV_W), jnp.float32)], axis=1)

    x_flat = x.reshape(b * s, d)

    out_flat = pl.pallas_call(
        attention_kernel,
        out_shape=jax.ShapeDtypeStruct((b * s, d), jnp.float32),
        # no grid: single invocation, everything resident in VMEM at these shapes
        scratch_shapes=[pltpu.VMEM((b * s, Q_W), jnp.float32)],
    )(x_flat, w_fused, cos_full, sin_full, wo)

    return out_flat.reshape(b, s, d)


# ---------------- pure-JAX reference (mirrors the torch forward with complex RoPE) ----------------
def ref_forward(x, wq, wk, wv, wo, cos, sin, mask):
    b, s, _ = x.shape
    q = (x @ wq).reshape(b, s, N_HEADS, HEAD_DIM)
    k = (x @ wk).reshape(b, s, N_KV_HEADS, HEAD_DIM)
    v = (x @ wv).reshape(b, s, N_KV_HEADS, HEAD_DIM)
    freqs_cis = cos + 1j * sin                                 # (s, hd//2)

    def rope(t):
        tc = t[..., 0::2] + 1j * t[..., 1::2]
        tc = tc * freqs_cis[None, :, None, :]
        return jnp.stack([tc.real, tc.imag], axis=-1).reshape(t.shape)

    q, k = rope(q), rope(k)
    k = jnp.repeat(k, N_REP, axis=2)                           # repeat_kv
    v = jnp.repeat(v, N_REP, axis=2)
    q, k, v = (t.transpose(0, 2, 1, 3) for t in (q, k, v))
    scores = jnp.einsum('bhqd,bhkd->bhqk', q, k) / math.sqrt(HEAD_DIM) + mask
    p = jax.nn.softmax(scores, axis=-1)
    out = jnp.einsum('bhqk,bhkd->bhqd', p, v)
    out = out.transpose(0, 2, 1, 3).reshape(b, s, -1)
    return out @ wo


if __name__ == "__main__":
    key = jax.random.PRNGKey(0)
    ks = jax.random.split(key, 5)
    x  = jax.random.normal(ks[0], (BATCH, SEQ, D_MODEL), jnp.float32)
    wq = jax.random.normal(ks[1], (D_MODEL, N_HEADS * HEAD_DIM), jnp.float32) * 0.05
    wk = jax.random.normal(ks[2], (D_MODEL, N_KV_HEADS * HEAD_DIM), jnp.float32) * 0.05
    wv = jax.random.normal(ks[3], (D_MODEL, N_KV_HEADS * HEAD_DIM), jnp.float32) * 0.05
    wo = jax.random.normal(ks[4], (N_HEADS * HEAD_DIM, D_MODEL), jnp.float32) * 0.05

    out = attention_pallas(x, wq, wk, wv, wo)
    jax.block_until_ready(out)

    cos, sin = rope_tables(SEQ, HEAD_DIM)
    mask = jnp.where(jnp.arange(SEQ)[None, :] > jnp.arange(SEQ)[:, None], -1e9, 0.0).astype(jnp.float32)
    ref = ref_forward(x, wq, wk, wv, wo, cos, sin, mask)

    assert out.shape == (BATCH, SEQ, D_MODEL)
    # tolerance accounts for the EUP approximate-reciprocal softmax normalization
    assert jnp.allclose(out, ref, atol=2e-3, rtol=2e-3), float(jnp.max(jnp.abs(out - ref)))

    print("KERNEL_OK")
</pallas_src>

<mosaic_0001>
module attributes {stable_mosaic.version = 11 : i64} {
  func.func @attention_kernel(%arg0: memref<16x32xf32, #tpu.memory_space<vmem>>, %arg1: memref<32x128xf32, #tpu.memory_space<vmem>>, %arg2: memref<16x64xf32, #tpu.memory_space<vmem>>, %arg3: memref<16x64xf32, #tpu.memory_space<vmem>>, %arg4: memref<32x32xf32, #tpu.memory_space<vmem>>, %arg5: memref<16x32xf32, #tpu.memory_space<vmem>>, %arg6: memref<16x32xf32, #tpu.memory_space<vmem>>) attributes {dimension_semantics = [], scalar_prefetch = 0 : i64, scratch_operands = 1 : i64, tpu.core_type = #tpu.core_type<tc>} {
    %c0 = arith.constant 0 : index
    %c0_0 = arith.constant 0 : index
    %0 = vector.load %arg0[%c0, %c0_0] : memref<16x32xf32, #tpu.memory_space<vmem>>, vector<16x32xf32>
    %c0_1 = arith.constant 0 : index
    %c0_2 = arith.constant 0 : index
    %1 = vector.load %arg1[%c0_1, %c0_2] : memref<32x128xf32, #tpu.memory_space<vmem>>, vector<32x128xf32>
    %cst = arith.constant dense<0.000000e+00> : vector<16x128xf32>
    %2 = tpu.matmul %0, %1, %cst {dimension_numbers = #tpu.dot_dimension_numbers<[1], [0], [0], [1], [0, 0, 1, 1], [], []>} : vector<16x32xf32>, vector<32x128xf32>, vector<16x128xf32> -> vector<16x128xf32>
    %3 = vector.extract_strided_slice %2 {offsets = [0, 0], sizes = [16, 64], strides = [1, 1]} : vector<16x128xf32> to vector<16x64xf32>
    %c0_3 = arith.constant 0 : index
    %c0_4 = arith.constant 0 : index
    %4 = vector.load %arg2[%c0_3, %c0_4] : memref<16x64xf32, #tpu.memory_space<vmem>>, vector<16x64xf32>
    %5 = arith.mulf %3, %4 : vector<16x64xf32>
    %6 = vector.extract_strided_slice %2 {offsets = [0, 64], sizes = [16, 64], strides = [1, 1]} : vector<16x128xf32> to vector<16x64xf32>
    %c0_5 = arith.constant 0 : index
    %c0_6 = arith.constant 0 : index
    %7 = vector.load %arg3[%c0_5, %c0_6] : memref<16x64xf32, #tpu.memory_space<vmem>>, vector<16x64xf32>
    %8 = arith.mulf %6, %7 : vector<16x64xf32>
    %9 = arith.addf %5, %8 : vector<16x64xf32>
    %10 = tpu.iota {dimensions = array<i32: 0>} : vector<8x8xi32>
    %11 = tpu.iota {dimensions = array<i32: 1>} : vector<8x8xi32>
    %12 = arith.cmpi sgt, %11, %10 : vector<8x8xi32>
    %cst_7 = arith.constant -1.000000e+09 : f32
    %cst_8 = arith.constant 0.000000e+00 : f32
    %13 = vector.broadcast %cst_7 : f32 to vector<8x8xf32>
    %14 = vector.broadcast %cst_8 : f32 to vector<8x8xf32>
    %15 = arith.select %12, %13, %14 : vector<8x8xi1>, vector<8x8xf32>
    %16 = vector.extract_strided_slice %9 {offsets = [0, 0], sizes = [8, 8], strides = [1, 1]} : vector<16x64xf32> to vector<8x8xf32>
    %17 = vector.extract_strided_slice %9 {offsets = [0, 32], sizes = [8, 8], strides = [1, 1]} : vector<16x64xf32> to vector<8x8xf32>
    %18 = vector.extract_strided_slice %9 {offsets = [0, 48], sizes = [8, 8], strides = [1, 1]} : vector<16x64xf32> to vector<8x8xf32>
    %cst_9 = arith.constant dense<0.000000e+00> : vector<8x8xf32>
    %19 = tpu.matmul %16, %17, %cst_9 {dimension_numbers = #tpu.dot_dimension_numbers<[1], [1], [0], [0], [0, 0, 1, 0], [], []>} : vector<8x8xf32>, vector<8x8xf32>, vector<8x8xf32> -> vector<8x8xf32>
    %20 = arith.addf %19, %15 : vector<8x8xf32>
    %cst_10 = arith.constant dense<0xFF800000> : vector<8xf32>
    %21 = vector.multi_reduction <maximumf>, %20, %cst_10 [1] : vector<8x8xf32> to vector<8xf32>
    %22 = vector.shape_cast %21 : vector<8xf32> to vector<8x1xf32>
    %23 = vector.broadcast %22 : vector<8x1xf32> to vector<8x8xf32>
    %24 = arith.subf %20, %23 : vector<8x8xf32>
    %25 = math.exp %24 : vector<8x8xf32>
    %cst_11 = arith.constant dense<0.000000e+00> : vector<8x8xf32>
    %26 = tpu.matmul %25, %18, %cst_11 {dimension_numbers = #tpu.dot_dimension_numbers<[1], [0], [0], [1], [0, 0, 1, 1], [], []>} : vector<8x8xf32>, vector<8x8xf32>, vector<8x8xf32> -> vector<8x8xf32>
    %cst_12 = arith.constant dense<0.000000e+00> : vector<8xf32>
    %27 = vector.multi_reduction <add>, %25, %cst_12 [1] : vector<8x8xf32> to vector<8xf32>
    %28 = vector.shape_cast %27 : vector<8xf32> to vector<8x1xf32>
    %29 = tpu.reciprocal %28 {approx = true} : vector<8x1xf32> -> vector<8x1xf32>
    %30 = vector.broadcast %29 : vector<8x1xf32> to vector<8x8xf32>
    %31 = arith.mulf %26, %30 : vector<8x8xf32>
    %c0_13 = arith.constant 0 : index
    %c0_14 = arith.constant 0 : index
    %32 = vector.load %arg6[%c0_13, %c0_14] : memref<16x32xf32, #tpu.memory_space<vmem>>, vector<8x8xf32>
    tpu.vector_store %arg6[%c0_13, %c0_14], %31 {strides = array<i32>} : memref<16x32xf32, #tpu.memory_space<vmem>>, vector<8x8xf32>,
    %33 = vector.extract_strided_slice %9 {offsets = [0, 8], sizes = [8, 8], strides = [1, 1]} : vector<16x64xf32> to vector<8x8xf32>
    %34 = vector.extract_strided_slice %9 {offsets = [0, 32], sizes = [8, 8], strides = [1, 1]} : vector<16x64xf32> to vector<8x8xf32>
    %35 = vector.extract_strided_slice %9 {offsets = [0, 48], sizes = [8, 8], strides = [1, 1]} : vector<16x64xf32> to vector<8x8xf32>
    %cst_15 = arith.constant dense<0.000000e+00> : vector<8x8xf32>
    %36 = tpu.matmul %33, %34, %cst_15 {dimension_numbers = #tpu.dot_dimension_numbers<[1], [1], [0], [0], [0, 0, 1, 0], [], []>} : vector<8x8xf32>, vector<8x8xf32>, vector<8x8xf32> -> vector<8x8xf32>
    %37 = arith.addf %36, %15 : vector<8x8xf32>
    %cst_16 = arith.constant dense<0xFF800000> : vector<8xf32>
    %38 = vector.multi_reduction <maximumf>, %37, %cst_16 [1] : vector<8x8xf32> to vector<8xf32>
    %39 = vector.shape_cast %38 : vector<8xf32> to vector<8x1xf32>
    %40 = vector.broadcast %39 : vector<8x1xf32> to vector<8x8xf32>
    %41 = arith.subf %37, %40 : vector<8x8xf32>
    %42 = math.exp %41 : vector<8x8xf32>
    %cst_17 = arith.constant dense<0.000000e+00> : vector<8x8xf32>
    %43 = tpu.matmul %42, %35, %cst_17 {dimension_numbers = #tpu.dot_dimension_numbers<[1], [0], [0], [1], [0, 0, 1, 1], [], []>} : vector<8x8xf32>, vector<8x8xf32>, vector<8x8xf32> -> vector<8x8xf32>
    %cst_18 = arith.constant dense<0.000000e+00> : vector<8xf32>
    %44 = vector.multi_reduction <add>, %42, %cst_18 [1] : vector<8x8xf32> to vector<8xf32>
    %45 = vector.shape_cast %44 : vector<8xf32> to vector<8x1xf32>
    %46 = tpu.reciprocal %45 {approx = true} : vector<8x1xf32> -> vector<8x1xf32>
    %47 = vector.broadcast %46 : vector<8x1xf32> to vector<8x8xf32>
    %48 = arith.mulf %43, %47 : vector<8x8xf32>
    %c0_19 = arith.constant 0 : index
    %c8 = arith.constant 8 : index
    %49 = vector.load %arg6[%c0_19, %c8] : memref<16x32xf32, #tpu.memory_space<vmem>>, vector<8x8xf32>
    tpu.vector_store %arg6[%c0_19, %c8], %48 {strides = array<i32>} : memref<16x32xf32, #tpu.memory_space<vmem>>, vector<8x8xf32>,
    %50 = vector.extract_strided_slice %9 {offsets = [0, 16], sizes = [8, 8], strides = [1, 1]} : vector<16x64xf32> to vector<8x8xf32>
    %51 = vector.extract_strided_slice %9 {offsets = [0, 40], sizes = [8, 8], strides = [1, 1]} : vector<16x64xf32> to vector<8x8xf32>
    %52 = vector.extract_strided_slice %9 {offsets = [0, 56], sizes = [8, 8], strides = [1, 1]} : vector<16x64xf32> to vector<8x8xf32>
    %cst_20 = arith.constant dense<0.000000e+00> : vector<8x8xf32>
    %53 = tpu.matmul %50, %51, %cst_20 {dimension_numbers = #tpu.dot_dimension_numbers<[1], [1], [0], [0], [0, 0, 1, 0], [], []>} : vector<8x8xf32>, vector<8x8xf32>, vector<8x8xf32> -> vector<8x8xf32>
    %54 = arith.addf %53, %15 : vector<8x8xf32>
    %cst_21 = arith.constant dense<0xFF800000> : vector<8xf32>
    %55 = vector.multi_reduction <maximumf>, %54, %cst_21 [1] : vector<8x8xf32> to vector<8xf32>
    %56 = vector.shape_cast %55 : vector<8xf32> to vector<8x1xf32>
    %57 = vector.broadcast %56 : vector<8x1xf32> to vector<8x8xf32>
    %58 = arith.subf %54, %57 : vector<8x8xf32>
    %59 = math.exp %58 : vector<8x8xf32>
    %cst_22 = arith.constant dense<0.000000e+00> : vector<8x8xf32>
    %60 = tpu.matmul %59, %52, %cst_22 {dimension_numbers = #tpu.dot_dimension_numbers<[1], [0], [0], [1], [0, 0, 1, 1], [], []>} : vector<8x8xf32>, vector<8x8xf32>, vector<8x8xf32> -> vector<8x8xf32>
    %cst_23 = arith.constant dense<0.000000e+00> : vector<8xf32>
    %61 = vector.multi_reduction <add>, %59, %cst_23 [1] : vector<8x8xf32> to vector<8xf32>
    %62 = vector.shape_cast %61 : vector<8xf32> to vector<8x1xf32>
    %63 = tpu.reciprocal %62 {approx = true} : vector<8x1xf32> -> vector<8x1xf32>
    %64 = vector.broadcast %63 : vector<8x1xf32> to vector<8x8xf32>
    %65 = arith.mulf %60, %64 : vector<8x8xf32>
    %c0_24 = arith.constant 0 : index
    %c16 = arith.constant 16 : index
    %66 = vector.load %arg6[%c0_24, %c16] : memref<16x32xf32, #tpu.memory_space<vmem>>, vector<8x8xf32>
    tpu.vector_store %arg6[%c0_24, %c16], %65 {strides = array<i32>} : memref<16x32xf32, #tpu.memory_space<vmem>>, vector<8x8xf32>,
    %67 = vector.extract_strided_slice %9 {offsets = [0, 24], sizes = [8, 8], strides = [1, 1]} : vector<16x64xf32> to vector<8x8xf32>
    %68 = vector.extract_strided_slice %9 {offsets = [0, 40], sizes = [8, 8], strides = [1, 1]} : vector<16x64xf32> to vector<8x8xf32>
    %69 = vector.extract_strided_slice %9 {offsets = [0, 56], sizes = [8, 8], strides = [1, 1]} : vector<16x64xf32> to vector<8x8xf32>
    %cst_25 = arith.constant dense<0.000000e+00> : vector<8x8xf32>
    %70 = tpu.matmul %67, %68, %cst_25 {dimension_numbers = #tpu.dot_dimension_numbers<[1], [1], [0], [0], [0, 0, 1, 0], [], []>} : vector<8x8xf32>, vector<8x8xf32>, vector<8x8xf32> -> vector<8x8xf32>
    %71 = arith.addf %70, %15 : vector<8x8xf32>
    %cst_26 = arith.constant dense<0xFF800000> : vector<8xf32>
    %72 = vector.multi_reduction <maximumf>, %71, %cst_26 [1] : vector<8x8xf32> to vector<8xf32>
    %73 = vector.shape_cast %72 : vector<8xf32> to vector<8x1xf32>
    %74 = vector.broadcast %73 : vector<8x1xf32> to vector<8x8xf32>
    %75 = arith.subf %71, %74 : vector<8x8xf32>
    %76 = math.exp %75 : vector<8x8xf32>
    %cst_27 = arith.constant dense<0.000000e+00> : vector<8x8xf32>
    %77 = tpu.matmul %76, %69, %cst_27 {dimension_numbers = #tpu.dot_dimension_numbers<[1], [0], [0], [1], [0, 0, 1, 1], [], []>} : vector<8x8xf32>, vector<8x8xf32>, vector<8x8xf32> -> vector<8x8xf32>
    %cst_28 = arith.constant dense<0.000000e+00> : vector<8xf32>
    %78 = vector.multi_reduction <add>, %76, %cst_28 [1] : vector<8x8xf32> to vector<8xf32>
    %79 = vector.shape_cast %78 : vector<8xf32> to vector<8x1xf32>
    %80 = tpu.reciprocal %79 {approx = true} : vector<8x1xf32> -> vector<8x1xf32>
    %81 = vector.broadcast %80 : vector<8x1xf32> to vector<8x8xf32>
    %82 = arith.mulf %77, %81 : vector<8x8xf32>
    %c0_29 = arith.constant 0 : index
    %c24 = arith.constant 24 : index
    %83 = vector.load %arg6[%c0_29, %c24] : memref<16x32xf32, #tpu.memory_space<vmem>>, vector<8x8xf32>
    tpu.vector_store %arg6[%c0_29, %c24], %82 {strides = array<i32>} : memref<16x32xf32, #tpu.memory_space<vmem>>, vector<8x8xf32>,
    %84 = vector.extract_strided_slice %9 {offsets = [8, 0], sizes = [8, 8], strides = [1, 1]} : vector<16x64xf32> to vector<8x8xf32>
    %85 = vector.extract_strided_slice %9 {offsets = [8, 32], sizes = [8, 8], strides = [1, 1]} : vector<16x64xf32> to vector<8x8xf32>
    %86 = vector.extract_strided_slice %9 {offsets = [8, 48], sizes = [8, 8], strides = [1, 1]} : vector<16x64xf32> to vector<8x8xf32>
    %cst_30 = arith.constant dense<0.000000e+00> : vector<8x8xf32>
    %87 = tpu.matmul %84, %85, %cst_30 {dimension_numbers = #tpu.dot_dimension_numbers<[1], [1], [0], [0], [0, 0, 1, 0], [], []>} : vector<8x8xf32>, vector<8x8xf32>, vector<8x8xf32> -> vector<8x8xf32>
    %88 = arith.addf %87, %15 : vector<8x8xf32>
    %cst_31 = arith.constant dense<0xFF800000> : vector<8xf32>
    %89 = vector.multi_reduction <maximumf>, %88, %cst_31 [1] : vector<8x8xf32> to vector<8xf32>
    %90 = vector.shape_cast %89 : vector<8xf32> to vector<8x1xf32>
    %91 = vector.broadcast %90 : vector<8x1xf32> to vector<8x8xf32>
    %92 = arith.subf %88, %91 : vector<8x8xf32>
    %93 = math.exp %92 : vector<8x8xf32>
    %cst_32 = arith.constant dense<0.000000e+00> : vector<8x8xf32>
    %94 = tpu.matmul %93, %86, %cst_32 {dimension_numbers = #tpu.dot_dimension_numbers<[1], [0], [0], [1], [0, 0, 1, 1], [], []>} : vector<8x8xf32>, vector<8x8xf32>, vector<8x8xf32> -> vector<8x8xf32>
    %cst_33 = arith.constant dense<0.000000e+00> : vector<8xf32>
    %95 = vector.multi_reduction <add>, %93, %cst_33 [1] : vector<8x8xf32> to vector<8xf32>
    %96 = vector.shape_cast %95 : vector<8xf32> to vector<8x1xf32>
    %97 = tpu.reciprocal %96 {approx = true} : vector<8x1xf32> -> vector<8x1xf32>
    %98 = vector.broadcast %97 : vector<8x1xf32> to vector<8x8xf32>
    %99 = arith.mulf %94, %98 : vector<8x8xf32>
    %c8_34 = arith.constant 8 : index
    %c0_35 = arith.constant 0 : index
    %100 = vector.load %arg6[%c8_34, %c0_35] : memref<16x32xf32, #tpu.memory_space<vmem>>, vector<8x8xf32>
    tpu.vector_store %arg6[%c8_34, %c0_35], %99 {strides = array<i32>} : memref<16x32xf32, #tpu.memory_space<vmem>>, vector<8x8xf32>,
    %101 = vector.extract_strided_slice %9 {offsets = [8, 8], sizes = [8, 8], strides = [1, 1]} : vector<16x64xf32> to vector<8x8xf32>
    %102 = vector.extract_strided_slice %9 {offsets = [8, 32], sizes = [8, 8], strides = [1, 1]} : vector<16x64xf32> to vector<8x8xf32>
    %103 = vector.extract_strided_slice %9 {offsets = [8, 48], sizes = [8, 8], strides = [1, 1]} : vector<16x64xf32> to vector<8x8xf32>
    %cst_36 = arith.constant dense<0.000000e+00> : vector<8x8xf32>
    %104 = tpu.matmul %101, %102, %cst_36 {dimension_numbers = #tpu.dot_dimension_numbers<[1], [1], [0], [0], [0, 0, 1, 0], [], []>} : vector<8x8xf32>, vector<8x8xf32>, vector<8x8xf32> -> vector<8x8xf32>
    %105 = arith.addf %104, %15 : vector<8x8xf32>
    %cst_37 = arith.constant dense<0xFF800000> : vector<8xf32>
    %106 = vector.multi_reduction <maximumf>, %105, %cst_37 [1] : vector<8x8xf32> to vector<8xf32>
    %107 = vector.shape_cast %106 : vector<8xf32> to vector<8x1xf32>
    %108 = vector.broadcast %107 : vector<8x1xf32> to vector<8x8xf32>
    %109 = arith.subf %105, %108 : vector<8x8xf32>
    %110 = math.exp %109 : vector<8x8xf32>
    %cst_38 = arith.constant dense<0.000000e+00> : vector<8x8xf32>
    %111 = tpu.matmul %110, %103, %cst_38 {dimension_numbers = #tpu.dot_dimension_numbers<[1], [0], [0], [1], [0, 0, 1, 1], [], []>} : vector<8x8xf32>, vector<8x8xf32>, vector<8x8xf32> -> vector<8x8xf32>
    %cst_39 = arith.constant dense<0.000000e+00> : vector<8xf32>
    %112 = vector.multi_reduction <add>, %110, %cst_39 [1] : vector<8x8xf32> to vector<8xf32>
    %113 = vector.shape_cast %112 : vector<8xf32> to vector<8x1xf32>
    %114 = tpu.reciprocal %113 {approx = true} : vector<8x1xf32> -> vector<8x1xf32>
    %115 = vector.broadcast %114 : vector<8x1xf32> to vector<8x8xf32>
    %116 = arith.mulf %111, %115 : vector<8x8xf32>
    %c8_40 = arith.constant 8 : index
    %c8_41 = arith.constant 8 : index
    %117 = vector.load %arg6[%c8_40, %c8_41] : memref<16x32xf32, #tpu.memory_space<vmem>>, vector<8x8xf32>
    tpu.vector_store %arg6[%c8_40, %c8_41], %116 {strides = array<i32>} : memref<16x32xf32, #tpu.memory_space<vmem>>, vector<8x8xf32>,
    %118 = vector.extract_strided_slice %9 {offsets = [8, 16], sizes = [8, 8], strides = [1, 1]} : vector<16x64xf32> to vector<8x8xf32>
    %119 = vector.extract_strided_slice %9 {offsets = [8, 40], sizes = [8, 8], strides = [1, 1]} : vector<16x64xf32> to vector<8x8xf32>
    %120 = vector.extract_strided_slice %9 {offsets = [8, 56], sizes = [8, 8], strides = [1, 1]} : vector<16x64xf32> to vector<8x8xf32>
    %cst_42 = arith.constant dense<0.000000e+00> : vector<8x8xf32>
    %121 = tpu.matmul %118, %119, %cst_42 {dimension_numbers = #tpu.dot_dimension_numbers<[1], [1], [0], [0], [0, 0, 1, 0], [], []>} : vector<8x8xf32>, vector<8x8xf32>, vector<8x8xf32> -> vector<8x8xf32>
    %122 = arith.addf %121, %15 : vector<8x8xf32>
    %cst_43 = arith.constant dense<0xFF800000> : vector<8xf32>
    %123 = vector.multi_reduction <maximumf>, %122, %cst_43 [1] : vector<8x8xf32> to vector<8xf32>
    %124 = vector.shape_cast %123 : vector<8xf32> to vector<8x1xf32>
    %125 = vector.broadcast %124 : vector<8x1xf32> to vector<8x8xf32>
    %126 = arith.subf %122, %125 : vector<8x8xf32>
    %127 = math.exp %126 : vector<8x8xf32>
    %cst_44 = arith.constant dense<0.000000e+00> : vector<8x8xf32>
    %128 = tpu.matmul %127, %120, %cst_44 {dimension_numbers = #tpu.dot_dimension_numbers<[1], [0], [0], [1], [0, 0, 1, 1], [], []>} : vector<8x8xf32>, vector<8x8xf32>, vector<8x8xf32> -> vector<8x8xf32>
    %cst_45 = arith.constant dense<0.000000e+00> : vector<8xf32>
    %129 = vector.multi_reduction <add>, %127, %cst_45 [1] : vector<8x8xf32> to vector<8xf32>
    %130 = vector.shape_cast %129 : vector<8xf32> to vector<8x1xf32>
    %131 = tpu.reciprocal %130 {approx = true} : vector<8x1xf32> -> vector<8x1xf32>
    %132 = vector.broadcast %131 : vector<8x1xf32> to vector<8x8xf32>
    %133 = arith.mulf %128, %132 : vector<8x8xf32>
    %c8_46 = arith.constant 8 : index
    %c16_47 = arith.constant 16 : index
    %134 = vector.load %arg6[%c8_46, %c16_47] : memref<16x32xf32, #tpu.memory_space<vmem>>, vector<8x8xf32>
    tpu.vector_store %arg6[%c8_46, %c16_47], %133 {strides = array<i32>} : memref<16x32xf32, #tpu.memory_space<vmem>>, vector<8x8xf32>,
    %135 = vector.extract_strided_slice %9 {offsets = [8, 24], sizes = [8, 8], strides = [1, 1]} : vector<16x64xf32> to vector<8x8xf32>
    %136 = vector.extract_strided_slice %9 {offsets = [8, 40], sizes = [8, 8], strides = [1, 1]} : vector<16x64xf32> to vector<8x8xf32>
    %137 = vector.extract_strided_slice %9 {offsets = [8, 56], sizes = [8, 8], strides = [1, 1]} : vector<16x64xf32> to vector<8x8xf32>
    %cst_48 = arith.constant dense<0.000000e+00> : vector<8x8xf32>
    %138 = tpu.matmul %135, %136, %cst_48 {dimension_numbers = #tpu.dot_dimension_numbers<[1], [1], [0], [0], [0, 0, 1, 0], [], []>} : vector<8x8xf32>, vector<8x8xf32>, vector<8x8xf32> -> vector<8x8xf32>
    %139 = arith.addf %138, %15 : vector<8x8xf32>
    %cst_49 = arith.constant dense<0xFF800000> : vector<8xf32>
    %140 = vector.multi_reduction <maximumf>, %139, %cst_49 [1] : vector<8x8xf32> to vector<8xf32>
    %141 = vector.shape_cast %140 : vector<8xf32> to vector<8x1xf32>
    %142 = vector.broadcast %141 : vector<8x1xf32> to vector<8x8xf32>
    %143 = arith.subf %139, %142 : vector<8x8xf32>
    %144 = math.exp %143 : vector<8x8xf32>
    %cst_50 = arith.constant dense<0.000000e+00> : vector<8x8xf32>
    %145 = tpu.matmul %144, %137, %cst_50 {dimension_numbers = #tpu.dot_dimension_numbers<[1], [0], [0], [1], [0, 0, 1, 1], [], []>} : vector<8x8xf32>, vector<8x8xf32>, vector<8x8xf32> -> vector<8x8xf32>
    %cst_51 = arith.constant dense<0.000000e+00> : vector<8xf32>
    %146 = vector.multi_reduction <add>, %144, %cst_51 [1] : vector<8x8xf32> to vector<8xf32>
    %147 = vector.shape_cast %146 : vector<8xf32> to vector<8x1xf32>
    %148 = tpu.reciprocal %147 {approx = true} : vector<8x1xf32> -> vector<8x1xf32>
    %149 = vector.broadcast %148 : vector<8x1xf32> to vector<8x8xf32>
    %150 = arith.mulf %145, %149 : vector<8x8xf32>
    %c8_52 = arith.constant 8 : index
    %c24_53 = arith.constant 24 : index
    %151 = vector.load %arg6[%c8_52, %c24_53] : memref<16x32xf32, #tpu.memory_space<vmem>>, vector<8x8xf32>
    tpu.vector_store %arg6[%c8_52, %c24_53], %150 {strides = array<i32>} : memref<16x32xf32, #tpu.memory_space<vmem>>, vector<8x8xf32>,
    %c0_54 = arith.constant 0 : index
    %c0_55 = arith.constant 0 : index
    %152 = vector.load %arg6[%c0_54, %c0_55] : memref<16x32xf32, #tpu.memory_space<vmem>>, vector<16x32xf32>
    %c0_56 = arith.constant 0 : index
    %c0_57 = arith.constant 0 : index
    %153 = vector.load %arg4[%c0_56, %c0_57] : memref<32x32xf32, #tpu.memory_space<vmem>>, vector<32x32xf32>
    %cst_58 = arith.constant dense<0.000000e+00> : vector<16x32xf32>
    %154 = tpu.matmul %152, %153, %cst_58 {dimension_numbers = #tpu.dot_dimension_numbers<[1], [0], [0], [1], [0, 0, 1, 1], [], []>} : vector<16x32xf32>, vector<32x32xf32>, vector<16x32xf32> -> vector<16x32xf32>
    %c0_59 = arith.constant 0 : index
    %c0_60 = arith.constant 0 : index
    %155 = vector.load %arg5[%c0_59, %c0_60] : memref<16x32xf32, #tpu.memory_space<vmem>>, vector<16x32xf32>
    tpu.vector_store %arg5[%c0_59, %c0_60], %154 {strides = array<i32>} : memref<16x32xf32, #tpu.memory_space<vmem>>, vector<16x32xf32>,
    return
  }
}

</mosaic_0001>

<bundles_post_ra>
// kernel: tpu_custom_call.1
= control target key start
LH: loop header
LB: loop body
LE: loop exit
PB: predicated region body
PF: predicated region fallthrough
CT: control target
= control target key end

     0   :  { %10 = vsyncpa [#allocation4], 0  ;;  %s1176_s0 = inlined_call_operand.hbm [shape: f32[16,32], index: 0, kind: input, shape index: {}]   ;;  %s1177_s1 = inlined_call_operand.hbm [shape: f32[32,128], index: 1, kind: input, shape index: {}]   ;;  %s1178_s2 = inlined_call_operand.hbm [shape: f32[16,64], index: 2, kind: input, shape index: {}]   ;;  %s1179_s3 = inlined_call_operand.hbm [shape: f32[16,64], index: 3, kind: input, shape index: {}]   ;;  %s1180_s4 = inlined_call_operand.hbm [shape: f32[32,32], index: 4, kind: input, shape index: {}]   ;;  %s1181_s5 = inlined_call_operand.hbm [shape: f32[16,32], index: 5, kind: output, shape index: {}]  }
   0x1   :  { %11 = vsyncpa [#allocation7], 0 }
   0x2   :  { %12 = vsyncpa [#allocation10], 0 }
   0x3   :  { %13 = vsyncpa [#allocation5], 0  ;;  %s31_s20 = sshll.u32 %s1177_s1, 4  ;;  %s982_s21 = smov [#allocation6]   ;;  %s32_s20 = int_to_ptr.hbm [resolvable:$true] %s31_s20 }
   0x4   :  { %s33_s22 = sshll.u32 %s982_s21, 4  ;;  %s57_s25 = sshll.u32 %s1179_s3, 4  ;;  %s34_s22 = int_to_ptr.vmem [resolvable:$true] %s33_s22  ;;  %s58_s25 = int_to_ptr.hbm [resolvable:$true] %s57_s25 }
   0x5   :  { %s983_s26 = smov 128   ;;  %s984_s27 = smov 8  }
   0x6   :  { %39 = dma.hbm_to_vmem [thread:$0]  %s32_s20, 512, %s34_s22, [#allocation7], %s983_s26, %s983_s26, %s984_s27  }
   0x7   :  { %s985_s28 = smov [#allocation9]   ;;  %s18_s1 = sshll.u32 %s1176_s0, 4  ;;  %s19_s1 = int_to_ptr.hbm [resolvable:$true] %s18_s1 }
   0x8   :  { %s59_s29 = sshll.u32 %s985_s28, 4  ;;  %s44_s8 = sshll.u32 %s1178_s2, 4  ;;  %s60_s29 = int_to_ptr.vmem [resolvable:$true] %s59_s29  ;;  %s45_s8 = int_to_ptr.hbm [resolvable:$true] %s44_s8 }
   0x9   :  { %65 = dma.hbm_to_vmem [thread:$0]  %s58_s25, 256, %s60_s29, [#allocation10], %s983_s26, %s983_s26, %s984_s27  }
   0xa   :  { %s986_s9 = smov [#allocation3]   ;;  %s987_s11 = smov [#allocation8]  }
   0xb   :  { %s20_s10 = sshll.u32 %s986_s9, 4  ;;  %s46_s0 = sshll.u32 %s987_s11, 4  ;;  %s21_s10 = int_to_ptr.vmem [resolvable:$true] %s20_s10  ;;  %s47_s0 = int_to_ptr.vmem [resolvable:$true] %s46_s0 }
   0xc   :  { %26 = dma.hbm_to_vmem [thread:$0]  %s19_s1, 256, %s21_s10, [#allocation4], %s983_s26, %s983_s26, %s984_s27  }
   0xd   :  { %s70_s14 = sshll.u32 %s1180_s4, 4  ;;  %s988_s2 = smov [#allocation11]   ;;  %s71_s14 = int_to_ptr.hbm [resolvable:$true] %s70_s14 }
   0xe   :  { %52 = dma.hbm_to_vmem [thread:$0]  %s45_s8, 256, %s47_s0, [#allocation7], %s983_s26, %s983_s26, %s984_s27  }
   0xf   :  { %s72_s15 = sshll.u32 %s988_s2, 4  ;;  %s73_s15 = int_to_ptr.vmem [resolvable:$true] %s72_s15 }
  0x10   :  { %78 = dma.hbm_to_vmem [thread:$0]  %s71_s14, 512, %s73_s15, [#allocation10], %s983_s26, %s983_s26, %s984_s27  }
  0x11   :  { %974 = dma.done.wait [#allocation4], 256  }
  0x12   :  { %975 = vsyncadd [#allocation4], 4294967040 }
  0x13   :  { %976 = dma.done.wait [#allocation7], 768  }
  0x14   :  { %977 = vsyncadd [#allocation7], 4294966528 }
  0x15   :  { %978 = dma.done.wait [#allocation10], 768  }
  0x16   :  { %979 = vsyncadd [#allocation10], 4294966528  ;;  %v104_v0 = vld [vmem:[#allocation6 + $0x18] sm:$0xff]  ;;  %v103_v1 = vld [vmem:[#allocation6 + $0x10] sm:$0xff]  ;;  %s989_s4 = smov 64   ;;  %vm105_vm0 = vcmask 261120   ;;  %v161_v25 = vlaneseq }
  0x17   :  { %124 = vmatpush.msra.mxu0 %v104_v0  ;;  %v139_v2 = vld [vmem:[#allocation9] sm:$0xff]  ;;  %v102_v3 = vld [vmem:[#allocation6 + $0x8] sm:$0xff]  ;;  %v101_v4 = vld [vmem:[#allocation6] sm:$0xff]  ;;  %s990_s16 = smov 104   ;;  %s991_s17 = smov 88   ;;  %vm170_vm1 = vcmask 64512  }
  0x18   :  { %143 = vrot.lane.b32.xlu0 %v139_v2, %s989_s4  ;;  %v99_v5 = vld [vmem:[#allocation3] sm:$0xff]  ;;  %v100_v6 = vld [vmem:[#allocation3 + $0x8] sm:$0xff]  ;;  %v135_v11 = vld [vmem:[#allocation8] sm:$0xff]  ;;  %s992_s18 = smov 96   ;;  %s993_s19 = smov 112   ;;  %v162_v26 = vshrl.u32 %v161_v25, 7 }
  0x19   :  { %125 = vmatpush.msra.mxu0 %v103_v1  ;;  %v140_v10 = vld [vmem:[#allocation9 + $0x8] sm:$0xff]  ;;  %s994_s20 = smov 120   ;;  %s995_s21 = smov 72   ;;  %v164_v27 = vand.u32 127, %v161_v25  ;;  %v997_v28 = vmov 0.0   ;;  %v136_v39 = vld [vmem:[#allocation8 + $0x8] sm:$0xff] }
  0x1a   :  { %s996_s22 = smov 80   ;;  %s998_s23 = smov 16   ;;  %vm295_vm3 = vcmask 130112   ;;  %vm366_vm4 = vcmask 195712   ;;  %vm430_vm5 = vcmask 261312  }
  0x1b   :  { %126 = vmatpush.msra.mxu0 %v102_v3  ;;  %vm165_vm2 = vcmp.gt.s32.totalorder %v164_v27, %v162_v26  ;;  %s999_s24 = smov 24   ;;  %s1000_s25 = smov [#allocation12]  }
  0x1c   :  { %v1080_v29 = vsel %vm165_vm2, -1e+09, %v997_v28  ;;  %s734_s28 = sshll.u32 %s1000_s25, 4  ;;  %s736_s6 = sshll.u32 %s1181_s5, 4  ;;  %s735_s28 = int_to_ptr.vmem [resolvable:$true] %s734_s28  ;;  %s737_s6 = int_to_ptr.hbm [resolvable:$true] %s736_s6 }
  0x1d   :  { %127 = vmatpush.msra.mxu0 %v101_v4 }
  0x1e   :  { %751 = vmatmul.msk.f32.vlgmr.msra.gmra.mxu0 %vm105_vm0, %v99_v5 }
  0x26   :  { %752 = vmatmul.msk.f32.gmra.mxu0 %vm105_vm0, %v100_v6 }
  0x8a   :  { %v144_v7 = vpop.permute.xlu0 %143 }
  0x9b   :  { %v129_v8 = vpop.f32.mrf.mxu0 }
  0x9c   :  { %v149_v9 = vmul.f32 %v144_v7, %v129_v8  ;;  %v137_v12 = vmul.f32 %v135_v11, %v129_v8 }
  0x9e   :  { %153 = vrot.lane.b32.xlu0 %v149_v9, %s989_s4 }
  0xa3   :  { %v132_v16 = vpop.f32.mrf.mxu0 }
  0xa4   :  { %v138_v40 = vmul.f32 %v136_v39, %v132_v16 }
  0xa6   :  { %145 = vrot.lane.b32.xlu0 %v140_v10, %s989_s4 }
 0x110   :  { %v154_v13 = vpop.permute.xlu0 %153 }
 0x111   :  { %v159_v14 = vadd.f32 %v154_v13, %v137_v12 }
 0x113   :  { %368 = vrot.lane.b32.xlu0 %v159_v14, %s990_s16  ;;  %299 = vrot.lane.b32.xlu2 %v159_v14, %s991_s17 }
 0x114   :  { %168 = vrot.lane.b32.xlu1 %v159_v14, %s992_s18 }
 0x118   :  { %v146_v15 = vpop.permute.xlu0 %145 }
 0x119   :  { %v150_v17 = vmul.f32 %v146_v15, %v132_v16 }
 0x11b   :  { %297 = vrot.lane.b32.xlu2 %v159_v14, %s993_s19 }
 0x11c   :  { %233 = vrot.lane.b32.xlu1 %v159_v14, %s994_s20 }
 0x123   :  { %331 = vrot.lane.b32.xlu2 %v159_v14, %s995_s21 }
 0x124   :  { %155 = vrot.lane.b32.xlu1 %v150_v17, %s989_s4 }
 0x12c   :  { %201 = vrot.lane.b32.xlu1 %v159_v14, %s996_s22 }
 0x16d   :  { %v300_v18 = vpop.permute.xlu2 %299 }
 0x175   :  { %v298_v19 = vpop.permute.xlu2 %297 }
 0x17d   :  { %v332_v20 = vpop.permute.xlu2 %331 }
 0x17e   :  { %352 = vmatpush.msra.mxu3 %v332_v20 }
 0x185   :  { %v369_v42 = vpop.permute.xlu0 %368 }
 0x186   :  { %v169_v21 = vpop.permute.xlu1 %168 }
 0x187   :  { %753 = vmatpush.xpose.msk.msra.mxu1 %vm170_vm1, %v169_v21  ;;  %756 = vmatpush.xpose.msk.msrb.mxu0 %vm170_vm1, %v169_v21 }
 0x18a   :  { %754 = vmatmul.msk.f32.vlgmr.msra.gmra.mxu1 %vm170_vm1, %v159_v14 }
 0x18b   :  { %759 = vmatpush.xpose.msk.msrb.mxu1 %vm170_vm1, %v300_v18 }
 0x18e   :  { %v234_v22 = vpop.permute.xlu1 %233 }
 0x18f   :  { %416 = vmatpush.msra.mxu1 %v332_v20  ;;  %757 = vmatmul.msk.f32.vlgmr.msrb.gmra.mxu0 %vm170_vm1, %v234_v22 }
 0x192   :  { %760 = vmatmul.msk.f32.vlgmr.msrb.gmra.mxu1 %vm170_vm1, %v298_v19 }
 0x196   :  { %v156_v23 = vpop.permute.xlu1 %155 }
 0x197   :  { %v1088_v41 = vadd.f32 %v156_v23, %v138_v40 }
 0x19e   :  { %v202_v24 = vpop.permute.xlu1 %201 }
 0x19f   :  { %222 = vmatpush.msra.mxu2 %v202_v24 }
 0x1a1   :  { %281 = vmatpush.msrb.mxu2 %v202_v24 }
 0x207   :  { %v192_v30 = vpop.f32.mrf.mxu1 }
 0x208   :  { %v193_v31 = vadd.f32 %v192_v30, %v1080_v29 }
 0x20a   :  { %v195_v32 = vsel %vm170_vm1, %v193_v31, -inf }
 0x20b   :  { %196 = vmax.xlane.f32.xlu2 %v195_v32 }
 0x20c   :  { %v254_v33 = vpop.f32.mrf.mxu0 }
 0x20d   :  { %v255_v34 = vadd.f32 %v254_v33, %v1080_v29 }
 0x20f   :  { %v322_v35 = vpop.f32.mrf.mxu1  ;;  %v257_v36 = vsel %vm170_vm1, %v255_v34, -inf }
 0x210   :  { %v323_v37 = vadd.f32 %v322_v35, %v1080_v29  ;;  %258 = vmax.xlane.f32.xlu0 %v257_v36 }
 0x212   :  { %v325_v38 = vsel %vm170_vm1, %v323_v37, -inf }
 0x213   :  { %326 = vmax.xlane.f32.xlu1 %v325_v38 }
 0x223   :  { %497 = vrot.lane.b32.xlu2 %v1088_v41, %s994_s20 }
 0x224   :  { %562 = vrot.lane.b32.xlu0 %v1088_v41, %s991_s17 }
 0x22b   :  { %560 = vrot.lane.b32.xlu2 %v1088_v41, %s993_s19 }
 0x22c   :  { %630 = vrot.lane.b32.xlu0 %v1088_v41, %s990_s16  ;;  %433 = vrot.lane.b32.xlu1 %v1088_v41, %s992_s18 }
 0x27e   :  { %v197_v43 = vpop.xlane.xlu2 %196 }
 0x27f   :  { %v198_v44 = vsub.f32 %v193_v31, %v197_v43 }
 0x281   :  { %v199_v45 = vmul.f32 1.442695, %v198_v44 }
 0x283   :  { %798 = vpow2.f32 %v199_v45  ;;  %v259_v46 = vpop.xlane.xlu0 %258 }
 0x284   :  { %v260_v47 = vsub.f32 %v255_v34, %v259_v46 }
 0x286   :  { %v261_v48 = vmul.f32 1.442695, %v260_v47  ;;  %v327_v49 = vpop.xlane.xlu1 %326  ;;  %v498_v56 = vpop.permute.xlu2 %497 }
 0x287   :  { %v328_v50 = vsub.f32 %v323_v37, %v327_v49 }
 0x288   :  { %800 = vpow2.f32 %v261_v48 }
 0x289   :  { %v1100_v51 = vpop.eup %798  ;;  %v329_v52 = vmul.f32 1.442695, %v328_v50 }
 0x28a   :  { %755 = vmatmul.msk.f32.vlgmr.msra.gmra.mxu2 %vm170_vm1, %v1100_v51 }
 0x28b   :  { %802 = vpow2.f32 %v329_v52  ;;  %762 = vmatpush.xpose.msk.msra.mxu2 %vm170_vm1, %v300_v18 }
 0x28e   :  { %v801_v53 = vpop.eup %800  ;;  %v561_v58 = vpop.permute.xlu2 %560 }
 0x28f   :  { %v286_v14 = vsel %vm170_vm1, %v801_v53, 0.0 }
 0x291   :  { %v803_v54 = vpop.eup %802 }
 0x292   :  { %758 = vmatmul.msk.f32.vlgmr.msrb.gmra.mxu2 %vm170_vm1, %v801_v53  ;;  %761 = vmatmul.msk.f32.vlgmr.msra.gmra.mxu3 %vm170_vm1, %v803_v54  ;;  %v357_v15 = vsel %vm170_vm1, %v803_v54, 0.0 }
 0x296   :  { %v563_v57 = vpop.permute.xlu0 %562 }
 0x29a   :  { %763 = vmatmul.msk.f32.vlgmr.msra.gmra.mxu2 %vm170_vm1, %v369_v42 }
 0x29e   :  { %v434_v55 = vpop.permute.xlu1 %433  ;;  %v631_v59 = vpop.permute.xlu0 %630 }
 0x29f   :  { %765 = vmatpush.xpose.msk.msrb.mxu3 %vm170_vm1, %v434_v55  ;;  %768 = vmatpush.xpose.msk.msrb.mxu2 %vm170_vm1, %v434_v55 }
 0x2a2   :  { %766 = vmatmul.msk.f32.vlgmr.msrb.gmra.mxu3 %vm170_vm1, %v1088_v41  ;;  %769 = vmatmul.msk.f32.vlgmr.msrb.gmra.mxu2 %vm170_vm1, %v498_v56 }
 0x2a3   :  { %771 = vmatpush.xpose.msk.msra.mxu3 %vm170_vm1, %v563_v57  ;;  %774 = vmatpush.xpose.msk.msra.mxu2 %vm170_vm1, %v563_v57 }
 0x2aa   :  { %772 = vmatmul.msk.f32.vlgmr.msra.gmra.mxu3 %vm170_vm1, %v561_v58  ;;  %775 = vmatmul.msk.f32.vlgmr.msra.gmra.mxu2 %vm170_vm1, %v631_v59 }
 0x30d   :  { %v1117_v60 = vpop.f32.mrf.mxu2 }
 0x315   :  { %v1119_v61 = vpop.f32.mrf.mxu2  ;;  %v1121_v62 = vpop.f32.mrf.mxu3 }
 0x31d   :  { %v389_v63 = vpop.f32.mrf.mxu2 }
 0x31e   :  { %v390_v0 = vadd.f32 %v389_v63, %v1080_v29 }
 0x320   :  { %v392_v1 = vsel %vm170_vm1, %v390_v0, -inf }
 0x321   :  { %393 = vmax.xlane.f32.xlu2 %v392_v1 }
 0x325   :  { %v456_v2 = vpop.f32.mrf.mxu3  ;;  %v518_v3 = vpop.f32.mrf.mxu2 }
 0x326   :  { %v457_v4 = vadd.f32 %v456_v2, %v1080_v29  ;;  %v519_v5 = vadd.f32 %v518_v3, %v1080_v29 }
 0x328   :  { %v521_v6 = vsel %vm170_vm1, %v519_v5, -inf  ;;  %v459_v7 = vsel %vm170_vm1, %v457_v4, -inf }
 0x329   :  { %522 = vmax.xlane.f32.xlu0 %v521_v6  ;;  %460 = vmax.xlane.f32.xlu1 %v459_v7  ;;  %v698_v7 = vld [vmem:[#allocation11 + $0x18] sm:$0xff] }
 0x32a   :  { %717 = vmatpush.msrb.mxu3 %v698_v7 }
 0x32d   :  { %v585_v8 = vpop.f32.mrf.mxu3  ;;  %v651_v9 = vpop.f32.mrf.mxu2 }
 0x32e   :  { %v586_v10 = vadd.f32 %v585_v8, %v1080_v29  ;;  %v652_v11 = vadd.f32 %v651_v9, %v1080_v29  ;;  %v697_v8 = vld [vmem:[#allocation11 + $0x10] sm:$0xff]  ;;  %v696_v9 = vld [vmem:[#allocation11 + $0x8] sm:$0xff] }
 0x32f   :  { %718 = vmatpush.msrb.mxu3 %v697_v8 }
 0x330   :  { %v588_v12 = vsel %vm170_vm1, %v586_v10, -inf  ;;  %v654_v13 = vsel %vm170_vm1, %v652_v11, -inf }
 0x331   :  { %589 = vmax.xlane.f32.xlu2 %v588_v12  ;;  %655 = vmax.xlane.f32.xlu1 %v654_v13 }
 0x332   :  { %719 = vmatpush.msrb.mxu3 %v696_v9 }
 0x339   :  { %287 = vadd.xlane.f32.xlu1 %v286_v14 }
 0x33d   :  { %465 = vrot.lane.b32.xlu0 %v1088_v41, %s996_s22 }
 0x341   :  { %358 = vadd.xlane.f32.xlu1 %v357_v15 }
 0x349   :  { %594 = vrot.lane.b32.xlu2 %v1088_v41, %s995_s21  ;;  %v227_v41 = vsel %vm170_vm1, %v1100_v51, 0.0 }
 0x394   :  { %v394_v16 = vpop.xlane.xlu2 %393 }
 0x395   :  { %v395_v17 = vsub.f32 %v390_v0, %v394_v16 }
 0x397   :  { %v396_v18 = vmul.f32 1.442695, %v395_v17 }
 0x399   :  { %804 = vpow2.f32 %v396_v18 }
 0x39c   :  { %v523_v19 = vpop.xlane.xlu0 %522  ;;  %v461_v20 = vpop.xlane.xlu1 %460 }
 0x39d   :  { %v524_v21 = vsub.f32 %v519_v5, %v523_v19  ;;  %v462_v25 = vsub.f32 %v457_v4, %v461_v20 }
 0x39f   :  { %v805_v22 = vpop.eup %804  ;;  %v525_v23 = vmul.f32 1.442695, %v524_v21  ;;  %v463_v31 = vmul.f32 1.442695, %v462_v25 }
 0x3a0   :  { %764 = vmatmul.msk.f32.vlgmr.msra.gmra.mxu1 %vm170_vm1, %v805_v22  ;;  %v421_v24 = vsel %vm170_vm1, %v805_v22, 0.0 }
 0x3a1   :  { %806 = vpow2.f32 %v525_v23  ;;  %422 = vadd.xlane.f32.xlu0 %v421_v24 }
 0x3a4   :  { %v590_v26 = vpop.xlane.xlu2 %589  ;;  %v656_v27 = vpop.xlane.xlu1 %655 }
 0x3a5   :  { %v591_v28 = vsub.f32 %v586_v10, %v590_v26  ;;  %v657_v33 = vsub.f32 %v652_v11, %v656_v27  ;;  %v695_v10 = vld [vmem:[#allocation11] sm:$0xff] }
 0x3a6   :  { %720 = vmatpush.msrb.mxu3 %v695_v10 }
 0x3a7   :  { %v807_v29 = vpop.eup %806  ;;  %v592_v30 = vmul.f32 1.442695, %v591_v28  ;;  %v658_v35 = vmul.f32 1.442695, %v657_v33 }
 0x3a8   :  { %v550_v32 = vsel %vm170_vm1, %v807_v29, 0.0 }
 0x3a9   :  { %808 = vpow2.f32 %v592_v30  ;;  %551 = vadd.xlane.f32.xlu1 %v550_v32 }
 0x3aa   :  { %810 = vpow2.f32 %v463_v31 }
 0x3ab   :  { %812 = vpow2.f32 %v658_v35 }
 0x3ac   :  { %v288_v34 = vpop.xlane.xlu1 %287  ;;  %v595_v39 = vpop.permute.xlu2 %594 }
 0x3af   :  { %v809_v36 = vpop.eup %808  ;;  %v466_v37 = vpop.permute.xlu0 %465 }
 0x3b0   :  { %486 = vmatpush.msra.mxu0 %v466_v37  ;;  %545 = vmatpush.msrb.mxu1 %v466_v37  ;;  %v620_v38 = vsel %vm170_vm1, %v809_v36, 0.0  ;;  %v811_v40 = vpop.eup %810 }
 0x3b1   :  { %770 = vmatmul.msk.f32.vlgmr.msrb.gmra.mxu1 %vm170_vm1, %v807_v29  ;;  %621 = vadd.xlane.f32.xlu2 %v620_v38  ;;  %v813_v43 = vpop.eup %812  ;;  %v491_v44 = vsel %vm170_vm1, %v811_v40, 0.0 }
 0x3b2   :  { %615 = vmatpush.msrb.mxu0 %v595_v39  ;;  %678 = vmatpush.msra.mxu1 %v595_v39  ;;  %v683_v49 = vsel %vm170_vm1, %v813_v43, 0.0 }
 0x3b3   :  { %228 = vadd.xlane.f32.xlu1 %v227_v41  ;;  %767 = vmatmul.msk.f32.vlgmr.msra.gmra.mxu0 %vm170_vm1, %v811_v40 }
 0x3b4   :  { %v359_v42 = vpop.xlane.xlu1 %358 }
 0x3b5   :  { %814 = vrcp.f32 %v359_v42 }
 0x3b6   :  { %816 = vrcp.f32 %v288_v34 }
 0x3b9   :  { %776 = vmatmul.msk.f32.vlgmr.msra.gmra.mxu1 %vm170_vm1, %v813_v43 }
 0x3bb   :  { %v815_v45 = vpop.eup %814  ;;  %492 = vadd.xlane.f32.xlu1 %v491_v44  ;;  %773 = vmatmul.msk.f32.vlgmr.msrb.gmra.mxu0 %vm170_vm1, %v809_v36 }
 0x3bc   :  { %v361_v46 = vmul.f32 %v815_v45, %v1121_v62  ;;  %v817_v47 = vpop.eup %816 }
 0x3bd   :  { %v290_v48 = vmul.f32 %v817_v47, %v1119_v61 }
 0x3be   :  { %363 = vrot.lane.b32.xlu0 %v361_v46, %s998_s23 }
 0x3d4   :  { %292 = vrot.lane.b32.xlu1 %v290_v48, %s984_s27 }
 0x3fe   :  { %684 = vadd.xlane.f32.xlu1 %v683_v49 }
 0x414   :  { %v423_v50 = vpop.xlane.xlu0 %422 }
 0x415   :  { %818 = vrcp.f32 %v423_v50 }
 0x41b   :  { %v819_v52 = vpop.eup %818 }
 0x41c   :  { %v552_v51 = vpop.xlane.xlu1 %551 }
 0x41d   :  { %v418_v53 = vpop.f32.mrf.mxu1 }
 0x41e   :  { %v425_v54 = vmul.f32 %v819_v52, %v418_v53 }
 0x420   :  { %427 = vrot.lane.b32.xlu2 %v425_v54, %s999_s24 }
 0x424   :  { %v622_v62 = vpop.xlane.xlu2 %621 }
 0x426   :  { %v229_v55 = vpop.xlane.xlu1 %228 }
 0x427   :  { %820 = vrcp.f32 %v229_v55 }
 0x428   :  { %822 = vrcp.f32 %v552_v51 }
 0x42d   :  { %v821_v56 = vpop.eup %820 }
 0x42e   :  { %v823_v57 = vpop.eup %822  ;;  %v231_v58 = vmul.f32 %v821_v56, %v1117_v60  ;;  %v493_v59 = vpop.xlane.xlu1 %492 }
 0x42f   :  { %v547_v61 = vpop.f32.mrf.mxu1  ;;  %824 = vrcp.f32 %v493_v59 }
 0x430   :  { %v554_v63 = vmul.f32 %v823_v57, %v547_v61  ;;  %232 = vst.msk [vmem:[#allocation2] sm:$0xff] %vm170_vm1, %v231_v58  ;;  %v488_v0 = vpop.f32.mrf.mxu0  ;;  %826 = vrcp.f32 %v622_v62  ;;  %v364_v6 = vpop.permute.xlu0 %363 }
 0x432   :  { %556 = vrot.lane.b32.xlu1 %v554_v63, %s984_s27 }
 0x435   :  { %v825_v1 = vpop.eup %824 }
 0x436   :  { %v495_v2 = vmul.f32 %v825_v1, %v488_v0  ;;  %v827_v3 = vpop.eup %826 }
 0x437   :  { %v680_v13 = vpop.f32.mrf.mxu1 }
 0x438   :  { %496 = vst.msk [vmem:[#allocation2 + $0x8] sm:$0xff] %vm170_vm1, %v495_v2  ;;  %v617_v4 = vpop.f32.mrf.mxu0 }
 0x439   :  { %v624_v5 = vmul.f32 %v827_v3, %v617_v4 }
 0x43b   :  { %626 = vrot.lane.b32.xlu0 %v624_v5, %s998_s23 }
 0x446   :  { %v293_v60 = vpop.permute.xlu1 %292 }
 0x447   :  { %296 = vst.msk [vmem:[#allocation2] sm:$0xff] %vm295_vm3, %v293_v60 }
 0x448   :  { %367 = vst.msk [vmem:[#allocation2] sm:$0xff] %vm366_vm4, %v364_v6 }
 0x471   :  { %v685_v11 = vpop.xlane.xlu1 %684 }
 0x472   :  { %828 = vrcp.f32 %v685_v11 }
 0x478   :  { %v829_v12 = vpop.eup %828 }
 0x479   :  { %v687_v14 = vmul.f32 %v829_v12, %v680_v13 }
 0x47a   :  { %v428_v15 = vpop.permute.xlu2 %427 }
 0x47b   :  { %689 = vrot.lane.b32.xlu1 %v687_v14, %s999_s24  ;;  %431 = vst.msk [vmem:[#allocation2] sm:$0xff] %vm430_vm5, %v428_v15 }
 0x482   :  { %v693_v16 = vld [vmem:[#allocation2] sm:$0xff] }
 0x483   :  { %777 = vmatmul.msk.f32.vlgmr.msrb.gmra.mxu3 %vm105_vm0, %v693_v16 }
 0x4a4   :  { %v557_v17 = vpop.permute.xlu1 %556 }
 0x4a5   :  { %559 = vst.msk [vmem:[#allocation2 + $0x8] sm:$0xff] %vm295_vm3, %v557_v17 }
 0x4ad   :  { %v627_v18 = vpop.permute.xlu0 %626 }
 0x4ae   :  { %629 = vst.msk [vmem:[#allocation2 + $0x8] sm:$0xff] %vm366_vm4, %v627_v18 }
 0x4ed   :  { %v690_v19 = vpop.permute.xlu1 %689 }
 0x4ee   :  { %692 = vst.msk [vmem:[#allocation2 + $0x8] sm:$0xff] %vm430_vm5, %v690_v19 }
 0x4f5   :  { %v694_v20 = vld [vmem:[#allocation2 + $0x8] sm:$0xff] }
 0x4f6   :  { %778 = vmatmul.msk.f32.gmra.mxu3 %vm105_vm0, %v694_v20 }
 0x506   :  { %v722_v21 = vpop.f32.mrf.mxu3 }
 0x507   :  { %728 = vst.msk [vmem:[#allocation12] sm:$0xff] %vm105_vm0, %v722_v21 }
 0x579   :  { %v725_v22 = vpop.f32.mrf.mxu3 }
 0x57a   :  { %729 = vst.msk [vmem:[#allocation12 + $0x8] sm:$0xff] %vm105_vm0, %v725_v22 }
 0x57b   :  { %742 = dma.vmem_to_hbm [thread:$0]  %s735_s28, 256, %s737_s6, [#allocation5], %s983_s26, %s983_s26, %s984_s27  }
 0x57c   :  { %980 = dma.done.wait [#allocation5], 256  }
 0x57d   :  { %981 = vsyncadd [#allocation5], 4294967040 }
 0x57e   :  { %747 = vsyncpa [#allocation4], 1 }
 0x57f   :  { %748 = vsyncpa [#allocation7], 1 }
 0x580   :  { %749 = vsyncpa [#allocation10], 1 }
 0x581   :  { %750 = vsyncpa [#allocation5], 1 }

</bundles_post_ra>
